<compile_context>
chip_gen: v7x
topology: tpu7x:2x2x1
jax: 0.10.0
libtpu: 0.0.40
codegen_flags: <defaults>
</compile_context>

<pallas_src>
import math

import jax
import jax.numpy as jnp
import numpy as np
from jax.experimental import pallas as pl
from jax.experimental.pallas import tpu as pltpu

_LOG_SQRT_2PI = math.log(math.sqrt(2.0 * math.pi))


def actor_kernel(x_ref, norm_col_ref, w1_ref, b1_ref, w2_ref, b2_ref,
                 logsig_ref, noise_ref,
                 act_ref, lp_ref):
    # Fold input normalization into W1's K-rows (tiny weight-tile scale
    # instead of a (TB, D_in) activation scale + temporary; x needs no pad).
    inv_norm = pl.reciprocal(norm_col_ref[...], approx=False)          # (D_in, 1)
    w1_scaled = w1_ref[...] * inv_norm                                  # (D_in, H)

    # Linear -> ReLU -> Linear (MXU); K=243 is handled directly.
    h = jnp.dot(x_ref[...], w1_scaled,
                preferred_element_type=jnp.float32) + b1_ref[...]
    h = jnp.maximum(h, 0.0)
    mean = jnp.dot(h, w2_ref[...],
                   preferred_element_type=jnp.float32) + b2_ref[...]

    # Normal(mean, std): reparameterized sample + log_prob.
    log_sigma = logsig_ref[...]                                         # (1, D_out)
    std = jnp.exp(log_sigma)
    noise = noise_ref[...]                                              # (TB, D_out)
    act_ref[...] = mean + std * noise
    # actions - mean == std * noise exactly, so the divide cancels:
    #   log_prob = -0.5 * noise^2 - log_sigma - log(sqrt(2*pi))
    lp_ref[...] = -0.5 * noise * noise - log_sigma - _LOG_SQRT_2PI


def actor_forward(x, norm_values, w1, b1, w2, b2, log_sigma, noise,
                  *, max_rows_per_block=512):
    B, D_in = x.shape
    H = w1.shape[1]
    D_out = w2.shape[1]

    # Stateful running-max norm update, hoisted out of the kernel: it needs
    # the whole batch at once, and hoisting it lets the MLP kernel grid over
    # the batch (pipelining + v7x megacore, VMEM flat in B).
    norm_new = jnp.maximum(norm_values,
                           jnp.max(jnp.abs(x), axis=0, keepdims=True))  # (1, D_in)
    norm_col = jnp.reshape(norm_new, (D_in, 1))                         # column for W1 fold

    # Batch tile: >=512 rows reaches ~85% of HBM roofline; small batches run
    # as a single full block.  Per-step VMEM ~= 2 * tb*D_in*4B (~1 MiB at
    # tb=512), far inside every generation's default scoped VMEM.
    tb = B if B <= max_rows_per_block else max_rows_per_block
    grid = (pl.cdiv(B, tb),)

    in_specs = [
        pl.BlockSpec((tb, D_in),  lambda i: (i, 0)),   # x
        pl.BlockSpec((D_in, 1),   lambda i: (0, 0)),   # norm column (resident)
        pl.BlockSpec((D_in, H),   lambda i: (0, 0)),   # w1          (resident)
        pl.BlockSpec((1, H),      lambda i: (0, 0)),   # b1
        pl.BlockSpec((H, D_out),  lambda i: (0, 0)),   # w2
        pl.BlockSpec((1, D_out),  lambda i: (0, 0)),   # b2
        pl.BlockSpec((1, D_out),  lambda i: (0, 0)),   # log_sigma
        pl.BlockSpec((tb, D_out), lambda i: (i, 0)),   # noise
    ]
    out_specs = (
        pl.BlockSpec((tb, D_out), lambda i: (i, 0)),   # actions
        pl.BlockSpec((tb, D_out), lambda i: (i, 0)),   # log_prob
    )

    actions, log_prob = pl.pallas_call(
        actor_kernel,
        out_shape=(jax.ShapeDtypeStruct((B, D_out), jnp.float32),
                   jax.ShapeDtypeStruct((B, D_out), jnp.float32)),
        grid=grid,
        in_specs=in_specs,
        out_specs=out_specs,
        compiler_params=pltpu.CompilerParams(
            dimension_semantics=("parallel",)),
    )(x, norm_col, w1, b1, w2, b2, log_sigma, noise)

    # norm_new is the updated value of the (non-trainable) norm parameter.
    return actions, log_prob, norm_new


actor_forward_jit = jax.jit(actor_forward, static_argnames=("max_rows_per_block",))


def reference_forward(x, norm_values, w1, b1, w2, b2, log_sigma, noise):
    norm_vals = jnp.maximum(norm_values, jnp.max(jnp.abs(x), axis=0, keepdims=True))
    x_norm = x / norm_vals
    h = jnp.maximum(x_norm @ w1 + b1, 0.0)
    mean = h @ w2 + b2
    std = jnp.exp(log_sigma)
    actions = mean + std * noise
    log_prob = (-(actions - mean) ** 2 / (2.0 * std * std)
                - log_sigma - math.log(math.sqrt(2.0 * math.pi)))
    return actions, log_prob, norm_vals


if __name__ == "__main__":
    # Small shapes consistent with the module (input_dim = 243 per docstring).
    B, D_IN, HID, D_OUT = 64, 243, 32, 8

    key = jax.random.PRNGKey(0)
    kx, kw1, kb1, kw2, kb2, knoise = jax.random.split(key, 6)

    x = jax.random.normal(kx, (B, D_IN), dtype=jnp.float32)

    # PyTorch Linear default init: U(-1/sqrt(fan_in), 1/sqrt(fan_in)).
    lim1 = 1.0 / math.sqrt(D_IN)
    lim2 = 1.0 / math.sqrt(HID)
    w1 = jax.random.uniform(kw1, (D_IN, HID), jnp.float32, -lim1, lim1)   # (in, out)
    b1 = jax.random.uniform(kb1, (1, HID), jnp.float32, -lim1, lim1)
    w2 = jax.random.uniform(kw2, (HID, D_OUT), jnp.float32, -lim2, lim2)  # (in, out)
    b2 = jax.random.uniform(kb2, (1, D_OUT), jnp.float32, -lim2, lim2)

    log_sigma = jnp.zeros((1, D_OUT), jnp.float32)   # nn.Parameter(torch.zeros(1, out))
    norm_values = jnp.ones((1, D_IN), jnp.float32)   # nn.Parameter(torch.ones(1, in))

    # TODO(synk): Normal(mean, std).sample()'s internal RNG has no direct Pallas
    # equivalent; the sample is reparameterized with a pre-drawn standard-normal
    # noise tensor (deterministic here).
    noise = jax.random.normal(knoise, (B, D_OUT), dtype=jnp.float32)

    actions, log_prob, new_norm = actor_forward_jit(
        x, norm_values, w1, b1, w2, b2, log_sigma, noise)
    jax.block_until_ready((actions, log_prob, new_norm))

    ref_a, ref_lp, ref_nv = reference_forward(
        x, norm_values, w1, b1, w2, b2, log_sigma, noise)
    np.testing.assert_allclose(np.asarray(actions), np.asarray(ref_a), rtol=1e-5, atol=1e-5)
    np.testing.assert_allclose(np.asarray(log_prob), np.asarray(ref_lp), rtol=1e-5, atol=1e-5)
    np.testing.assert_allclose(np.asarray(new_norm), np.asarray(ref_nv), rtol=1e-6, atol=1e-6)

    print("KERNEL_OK")
</pallas_src>

<mosaic_0001>
module attributes {stable_mosaic.version = 11 : i64} {
  func.func @actor_kernel(%arg0: i32, %arg1: memref<64x243xf32, #tpu.memory_space<vmem>>, %arg2: memref<243x1xf32, #tpu.memory_space<vmem>>, %arg3: memref<243x32xf32, #tpu.memory_space<vmem>>, %arg4: memref<1x32xf32, #tpu.memory_space<vmem>>, %arg5: memref<32x8xf32, #tpu.memory_space<vmem>>, %arg6: memref<1x8xf32, #tpu.memory_space<vmem>>, %arg7: memref<1x8xf32, #tpu.memory_space<vmem>>, %arg8: memref<64x8xf32, #tpu.memory_space<vmem>>, %arg9: memref<64x8xf32, #tpu.memory_space<vmem>>, %arg10: memref<64x8xf32, #tpu.memory_space<vmem>>) attributes {dimension_semantics = [#tpu.dimension_semantics<parallel>], iteration_bounds = array<i64: 1>, scalar_prefetch = 0 : i64, scratch_operands = 0 : i64, tpu.core_type = #tpu.core_type<tc>, window_params = [{transform_indices = @transform_0, window_bounds = array<i64: 64, 243>}, {pipeline_mode = #tpu.pipeline_mode<synchronous>, transform_indices = @transform_1, window_bounds = array<i64: 243, 1>}, {pipeline_mode = #tpu.pipeline_mode<synchronous>, transform_indices = @transform_2, window_bounds = array<i64: 243, 32>}, {pipeline_mode = #tpu.pipeline_mode<synchronous>, transform_indices = @transform_3, window_bounds = array<i64: 1, 32>}, {pipeline_mode = #tpu.pipeline_mode<synchronous>, transform_indices = @transform_4, window_bounds = array<i64: 32, 8>}, {pipeline_mode = #tpu.pipeline_mode<synchronous>, transform_indices = @transform_5, window_bounds = array<i64: 1, 8>}, {pipeline_mode = #tpu.pipeline_mode<synchronous>, transform_indices = @transform_6, window_bounds = array<i64: 1, 8>}, {transform_indices = @transform_7, window_bounds = array<i64: 64, 8>}, {transform_indices = @transform_8, window_bounds = array<i64: 64, 8>}, {transform_indices = @transform_9, window_bounds = array<i64: 64, 8>}]} {
    %c0 = arith.constant 0 : index
    %c0_0 = arith.constant 0 : index
    %0 = vector.load %arg2[%c0, %c0_0] : memref<243x1xf32, #tpu.memory_space<vmem>>, vector<243x1xf32>
    %1 = tpu.reciprocal %0 : vector<243x1xf32> -> vector<243x1xf32>
    %c0_1 = arith.constant 0 : index
    %c0_2 = arith.constant 0 : index
    %2 = vector.load %arg3[%c0_1, %c0_2] : memref<243x32xf32, #tpu.memory_space<vmem>>, vector<243x32xf32>
    %3 = vector.broadcast %1 : vector<243x1xf32> to vector<243x32xf32>
    %4 = arith.mulf %2, %3 : vector<243x32xf32>
    %c0_3 = arith.constant 0 : index
    %c0_4 = arith.constant 0 : index
    %5 = vector.load %arg1[%c0_3, %c0_4] : memref<64x243xf32, #tpu.memory_space<vmem>>, vector<64x243xf32>
    %cst = arith.constant dense<0.000000e+00> : vector<64x32xf32>
    %6 = tpu.matmul %5, %4, %cst {dimension_numbers = #tpu.dot_dimension_numbers<[1], [0], [0], [1], [0, 0, 1, 1], [], []>} : vector<64x243xf32>, vector<243x32xf32>, vector<64x32xf32> -> vector<64x32xf32>
    %c0_5 = arith.constant 0 : index
    %c0_6 = arith.constant 0 : index
    %7 = vector.load %arg4[%c0_5, %c0_6] : memref<1x32xf32, #tpu.memory_space<vmem>>, vector<1x32xf32>
    %8 = vector.broadcast %7 : vector<1x32xf32> to vector<64x32xf32>
    %9 = arith.addf %6, %8 : vector<64x32xf32>
    %cst_7 = arith.constant 0.000000e+00 : f32
    %10 = vector.broadcast %cst_7 : f32 to vector<64x32xf32>
    %11 = arith.maximumf %9, %10 : vector<64x32xf32>
    %c0_8 = arith.constant 0 : index
    %c0_9 = arith.constant 0 : index
    %12 = vector.load %arg5[%c0_8, %c0_9] : memref<32x8xf32, #tpu.memory_space<vmem>>, vector<32x8xf32>
    %cst_10 = arith.constant dense<0.000000e+00> : vector<64x8xf32>
    %13 = tpu.matmul %11, %12, %cst_10 {dimension_numbers = #tpu.dot_dimension_numbers<[1], [0], [0], [1], [0, 0, 1, 1], [], []>} : vector<64x32xf32>, vector<32x8xf32>, vector<64x8xf32> -> vector<64x8xf32>
    %c0_11 = arith.constant 0 : index
    %c0_12 = arith.constant 0 : index
    %14 = vector.load %arg6[%c0_11, %c0_12] : memref<1x8xf32, #tpu.memory_space<vmem>>, vector<1x8xf32>
    %15 = vector.broadcast %14 : vector<1x8xf32> to vector<64x8xf32>
    %16 = arith.addf %13, %15 : vector<64x8xf32>
    %c0_13 = arith.constant 0 : index
    %c0_14 = arith.constant 0 : index
    %17 = vector.load %arg7[%c0_13, %c0_14] : memref<1x8xf32, #tpu.memory_space<vmem>>, vector<1x8xf32>
    %18 = math.exp %17 : vector<1x8xf32>
    %c0_15 = arith.constant 0 : index
    %c0_16 = arith.constant 0 : index
    %19 = vector.load %arg8[%c0_15, %c0_16] : memref<64x8xf32, #tpu.memory_space<vmem>>, vector<64x8xf32>
    %20 = vector.broadcast %18 : vector<1x8xf32> to vector<64x8xf32>
    %21 = arith.mulf %20, %19 : vector<64x8xf32>
    %22 = arith.addf %16, %21 : vector<64x8xf32>
    %c0_17 = arith.constant 0 : index
    %c0_18 = arith.constant 0 : index
    %23 = vector.load %arg9[%c0_17, %c0_18] : memref<64x8xf32, #tpu.memory_space<vmem>>, vector<64x8xf32>
    tpu.vector_store %arg9[%c0_17, %c0_18], %22 {strides = array<i32>} : memref<64x8xf32, #tpu.memory_space<vmem>>, vector<64x8xf32>,
    %cst_19 = arith.constant -5.000000e-01 : f32
    %24 = vector.broadcast %cst_19 : f32 to vector<64x8xf32>
    %25 = arith.mulf %24, %19 : vector<64x8xf32>
    %26 = arith.mulf %25, %19 : vector<64x8xf32>
    %27 = vector.broadcast %17 : vector<1x8xf32> to vector<64x8xf32>
    %28 = arith.subf %26, %27 : vector<64x8xf32>
    %cst_20 = arith.constant 0.918938517 : f32
    %29 = vector.broadcast %cst_20 : f32 to vector<64x8xf32>
    %30 = arith.subf %28, %29 : vector<64x8xf32>
    %c0_21 = arith.constant 0 : index
    %c0_22 = arith.constant 0 : index
    %31 = vector.load %arg10[%c0_21, %c0_22] : memref<64x8xf32, #tpu.memory_space<vmem>>, vector<64x8xf32>
    tpu.vector_store %arg10[%c0_21, %c0_22], %30 {strides = array<i32>} : memref<64x8xf32, #tpu.memory_space<vmem>>, vector<64x8xf32>,
    return
  }
  func.func @transform_0(%arg0: i32) -> (i32, i32) {
    %c0_i32 = arith.constant 0 : i32
    %c0_i32_0 = arith.constant 0 : i32
    return %arg0, %c0_i32 : i32, i32
  }
  func.func @transform_1(%arg0: i32) -> (i32, i32) {
    %c0_i32 = arith.constant 0 : i32
    %c0_i32_0 = arith.constant 0 : i32
    %c0_i32_1 = arith.constant 0 : i32
    return %c0_i32, %c0_i32_0 : i32, i32
  }
  func.func @transform_2(%arg0: i32) -> (i32, i32) {
    %c0_i32 = arith.constant 0 : i32
    %c0_i32_0 = arith.constant 0 : i32
    %c0_i32_1 = arith.constant 0 : i32
    return %c0_i32, %c0_i32_0 : i32, i32
  }
  func.func @transform_3(%arg0: i32) -> (i32, i32) {
    %c0_i32 = arith.constant 0 : i32
    %c0_i32_0 = arith.constant 0 : i32
    %c0_i32_1 = arith.constant 0 : i32
    return %c0_i32, %c0_i32_0 : i32, i32
  }
  func.func @transform_4(%arg0: i32) -> (i32, i32) {
    %c0_i32 = arith.constant 0 : i32
    %c0_i32_0 = arith.constant 0 : i32
    %c0_i32_1 = arith.constant 0 : i32
    return %c0_i32, %c0_i32_0 : i32, i32
  }
  func.func @transform_5(%arg0: i32) -> (i32, i32) {
    %c0_i32 = arith.constant 0 : i32
    %c0_i32_0 = arith.constant 0 : i32
    %c0_i32_1 = arith.constant 0 : i32
    return %c0_i32, %c0_i32_0 : i32, i32
  }
  func.func @transform_6(%arg0: i32) -> (i32, i32) {
    %c0_i32 = arith.constant 0 : i32
    %c0_i32_0 = arith.constant 0 : i32
    %c0_i32_1 = arith.constant 0 : i32
    return %c0_i32, %c0_i32_0 : i32, i32
  }
  func.func @transform_7(%arg0: i32) -> (i32, i32) {
    %c0_i32 = arith.constant 0 : i32
    %c0_i32_0 = arith.constant 0 : i32
    return %arg0, %c0_i32 : i32, i32
  }
  func.func @transform_8(%arg0: i32) -> (i32, i32) {
    %c0_i32 = arith.constant 0 : i32
    %c0_i32_0 = arith.constant 0 : i32
    return %arg0, %c0_i32 : i32, i32
  }
  func.func @transform_9(%arg0: i32) -> (i32, i32) {
    %c0_i32 = arith.constant 0 : i32
    %c0_i32_0 = arith.constant 0 : i32
    return %arg0, %c0_i32 : i32, i32
  }
}

</mosaic_0001>

<bundles_post_ra>
// kernel: actor_forward.1
= control target key start
LH: loop header
LB: loop body
LE: loop exit
PB: predicated region body
PF: predicated region fallthrough
CT: control target
= control target key end

     0   :  { %v925_v0 = vmov 0   ;;  %v926_v19 = vmov 0.0|0.0   ;;  %vm333_vm0 = vcmask 941056   ;;  %vm358_vm1 = vcmask 1042432   ;;  %s1376_s1 = inlined_call_operand.vmem [shape: f32[243,1], index: 1, kind: input, shape index: {}]   ;;  %s1377_s0 = inlined_call_operand.vmem [shape: f32[64,243], index: 0, kind: input, shape index: {}]   ;;  %s1378_s2 = inlined_call_operand.vmem [shape: f32[243,32], index: 2, kind: input, shape index: {}]   ;;  %s1379_s4 = inlined_call_operand.vmem [shape: f32[32,8], index: 4, kind: input, shape index: {}]   ;;  %s1380_s3 = inlined_call_operand.vmem [shape: f32[1,32], index: 3, kind: input, shape index: {}]   ;;  %s1381_s6 = inlined_call_operand.vmem [shape: f32[1,8], index: 6, kind: input, shape index: {}]   ;;  %s1382_s7 = inlined_call_operand.vmem [shape: f32[64,8], index: 7, kind: input, shape index: {}]   ;;  %s1383_s9 = inlined_call_operand.vmem [shape: f32[64,8], index: 9, kind: output, shape index: {1}]   ;;  %s1384_s5 = inlined_call_operand.vmem [shape: f32[1,8], index: 5, kind: input, shape index: {}]   ;;  %s1385_s8 = inlined_call_operand.vmem [shape: f32[64,8], index: 8, kind: output, shape index: {0}]  }
   0x1   :  { %860 = vset.pattern.permute.xlu1 %v925_v0  ;;  %859 = vset.pattern.permute.xlu0 %v925_v0  ;;  %v33_v1 = vld [vmem:[%s1376_s1 + $0x10] sm:$0xff]  ;;  %v31_v2 = vld [vmem:[%s1376_s1] sm:$0xff]  ;;  %v34_v3 = vld [vmem:[%s1376_s1 + $0x18] sm:$0xff]  ;;  %vm486_vm2 = vcmask 261120   ;;  %vm649_vm3 = vcmask 64512  }
   0x2   :  { %861 = vrcp.f32 %v33_v1  ;;  %v32_v4 = vld [vmem:[%s1376_s1 + $0x8] sm:$0xff]  ;;  %v35_v6 = vld [vmem:[%s1376_s1 + $0x20] sm:$0xff]  ;;  %v38_v7 = vld [vmem:[%s1376_s1 + $0x38] sm:$0xff]  ;;  %771 = vmatprep.subr.bf16.mxu0 %v926_v19  ;;  %824 = vmatprep.subr.bf16.mxu1 %v926_v19 }
   0x3   :  { %863 = vrcp.f32 %v31_v2  ;;  %v36_v5 = vld [vmem:[%s1376_s1 + $0x28] sm:$0xff]  ;;  %v37_v8 = vld [vmem:[%s1376_s1 + $0x30] sm:$0xff]  ;;  %v39_v13 = vld [vmem:[%s1376_s1 + $0x40] sm:$0xff] }
   0x4   :  { %865 = vrcp.f32 %v34_v3  ;;  %v40_v11 = vld [vmem:[%s1376_s1 + $0x48] sm:$0xff]  ;;  %v42_v15 = vld [vmem:[%s1376_s1 + $0x58] sm:$0xff]  ;;  %v41_v17 = vld [vmem:[%s1376_s1 + $0x50] sm:$0xff] }
   0x5   :  { %867 = vrcp.f32 %v32_v4  ;;  %v44_v20 = vld [vmem:[%s1376_s1 + $0x68] sm:$0xff]  ;;  %v43_v22 = vld [vmem:[%s1376_s1 + $0x60] sm:$0xff]  ;;  %v46_v24 = vld [vmem:[%s1376_s1 + $0x78] sm:$0xff] }
   0x6   :  { %869 = vrcp.f32 %v36_v5  ;;  %v45_v26 = vld [vmem:[%s1376_s1 + $0x70] sm:$0xff]  ;;  %v48_v28 = vld [vmem:[%s1376_s1 + $0x88] sm:$0xff]  ;;  %v47_v30 = vld [vmem:[%s1376_s1 + $0x80] sm:$0xff] }
   0x7   :  { %871 = vrcp.f32 %v35_v6  ;;  %v50_v32 = vld [vmem:[%s1376_s1 + $0x98] sm:$0xff]  ;;  %v49_v34 = vld [vmem:[%s1376_s1 + $0x90] sm:$0xff]  ;;  %v52_v36 = vld [vmem:[%s1376_s1 + $0xa8] sm:$0xff] }
   0x8   :  { %873 = vrcp.f32 %v38_v7  ;;  %v51_v38 = vld [vmem:[%s1376_s1 + $0xa0] sm:$0xff]  ;;  %v54_v40 = vld [vmem:[%s1376_s1 + $0xb8] sm:$0xff]  ;;  %v53_v42 = vld [vmem:[%s1376_s1 + $0xb0] sm:$0xff] }
   0x9   :  { %875 = vrcp.f32 %v37_v8  ;;  %v56_v44 = vld [vmem:[%s1376_s1 + $0xc8] sm:$0xff]  ;;  %v55_v46 = vld [vmem:[%s1376_s1 + $0xc0] sm:$0xff]  ;;  %v58_v48 = vld [vmem:[%s1376_s1 + $0xd8] sm:$0xff] }
   0xa   :  { %877 = vrcp.f32 %v40_v11  ;;  %v57_v50 = vld [vmem:[%s1376_s1 + $0xd0] sm:$0xff]  ;;  %v60_v52 = vld [vmem:[%s1376_s1 + $0xe8] sm:$0xff]  ;;  %v59_v54 = vld [vmem:[%s1376_s1 + $0xe0] sm:$0xff] }
   0xb   :  { %879 = vrcp.f32 %v39_v13  ;;  %v61_v57 = vld [vmem:[%s1376_s1 + $0xf0] sm:$0x7]  ;;  %v311_v0 = vld [vmem:[%s1377_s0 + $0x8] sm:$0xff]  ;;  %v93_v4 = vld [vmem:[%s1378_s2] sm:$0xff] }
   0xc   :  { %v862_v9 = vpop.eup %861  ;;  %881 = vrcp.f32 %v42_v15  ;;  %714 = vmatprep.mubr.msk.f32.mxu0 %vm333_vm0, %v311_v0  ;;  %v323_v1 = vld [vmem:[%s1377_s0 + $0x68] sm:$0xff]  ;;  %v95_v7 = vld [vmem:[%s1378_s2 + $0x10] sm:$0xff]  ;;  %v96_v8 = vld [vmem:[%s1378_s2 + $0x18] sm:$0xff] }
   0xd   :  { %v864_v10 = vpop.eup %863  ;;  %136 = vperm.xlu1 %860, %v862_v9   ;;  %883 = vrcp.f32 %v41_v17  ;;  %720 = vmatprep.mubr.msk.f32.mxu1 %vm333_vm0, %v323_v1  ;;  %v94_v5 = vld [vmem:[%s1378_s2 + $0x8] sm:$0xff]  ;;  %v97_v17 = vld [vmem:[%s1378_s2 + $0x20] sm:$0xff] }
   0xe   :  { %v866_v12 = vpop.eup %865  ;;  %126 = vperm.xlu0 %859, %v864_v10   ;;  %885 = vrcp.f32 %v44_v20 }
   0xf   :  { %v868_v14 = vpop.eup %867  ;;  %887 = vrcp.f32 %v43_v22 }
  0x10   :  { %v870_v16 = vpop.eup %869  ;;  %889 = vrcp.f32 %v46_v24  ;;  %v100_v24 = vld [vmem:[%s1378_s2 + $0x38] sm:$0xff] }
  0x11   :  { %141 = vperm.xlu1 %860, %v866_v12   ;;  %v872_v18 = vpop.eup %871  ;;  %891 = vrcp.f32 %v45_v26 }
  0x12   :  { %131 = vperm.xlu0 %859, %v868_v14   ;;  %v874_v21 = vpop.eup %873  ;;  %893 = vrcp.f32 %v48_v28 }
  0x13   :  { %v876_v23 = vpop.eup %875  ;;  %895 = vrcp.f32 %v47_v30 }
  0x14   :  { %v878_v25 = vpop.eup %877  ;;  %897 = vrcp.f32 %v50_v32  ;;  %v101_v32 = vld [vmem:[%s1378_s2 + $0x40] sm:$0xff] }
  0x15   :  { %151 = vperm.xlu1 %860, %v870_v16   ;;  %v880_v27 = vpop.eup %879  ;;  %899 = vrcp.f32 %v49_v34  ;;  %v98_v16 = vld [vmem:[%s1378_s2 + $0x28] sm:$0xff] }
  0x16   :  { %146 = vperm.xlu0 %859, %v872_v18   ;;  %v882_v29 = vpop.eup %881  ;;  %901 = vrcp.f32 %v52_v36 }
  0x17   :  { %v884_v31 = vpop.eup %883  ;;  %903 = vrcp.f32 %v51_v38  ;;  %v104_v38 = vld [vmem:[%s1378_s2 + $0x58] sm:$0xff] }
  0x18   :  { %v886_v33 = vpop.eup %885  ;;  %905 = vrcp.f32 %v54_v40 }
  0x19   :  { %161 = vperm.xlu1 %860, %v874_v21   ;;  %v888_v35 = vpop.eup %887  ;;  %907 = vrcp.f32 %v53_v42 }
  0x1a   :  { %156 = vperm.xlu0 %859, %v876_v23   ;;  %v890_v37 = vpop.eup %889  ;;  %909 = vrcp.f32 %v56_v44 }
  0x1b   :  { %v892_v39 = vpop.eup %891  ;;  %911 = vrcp.f32 %v55_v46  ;;  %v105_v46 = vld [vmem:[%s1378_s2 + $0x60] sm:$0xff] }
  0x1c   :  { %v894_v41 = vpop.eup %893  ;;  %913 = vrcp.f32 %v58_v48 }
  0x1d   :  { %171 = vperm.xlu1 %860, %v878_v25   ;;  %v896_v43 = vpop.eup %895  ;;  %915 = vrcp.f32 %v57_v50  ;;  %v99_v25 = vld [vmem:[%s1378_s2 + $0x30] sm:$0xff] }
  0x1e   :  { %166 = vperm.xlu0 %859, %v880_v27   ;;  %v898_v45 = vpop.eup %897  ;;  %917 = vrcp.f32 %v60_v52  ;;  %v108_v52 = vld [vmem:[%s1378_s2 + $0x78] sm:$0xff] }
  0x1f   :  { %v900_v47 = vpop.eup %899  ;;  %919 = vrcp.f32 %v59_v54 }
  0x20   :  { %v902_v49 = vpop.eup %901  ;;  %921 = vrcp.f32 %v61_v57 }
  0x21   :  { %181 = vperm.xlu1 %860, %v882_v29   ;;  %v904_v51 = vpop.eup %903 }
  0x22   :  { %176 = vperm.xlu0 %859, %v884_v31   ;;  %v906_v53 = vpop.eup %905  ;;  %v102_v31 = vld [vmem:[%s1378_s2 + $0x48] sm:$0xff] }
  0x23   :  { %v908_v55 = vpop.eup %907 }
  0x24   :  { %v910_v56 = vpop.eup %909 }
  0x25   :  { %191 = vperm.xlu1 %860, %v886_v33   ;;  %v912_v58 = vpop.eup %911 }
  0x26   :  { %186 = vperm.xlu0 %859, %v888_v35   ;;  %v914_v59 = vpop.eup %913 }
  0x27   :  { %v916_v60 = vpop.eup %915 }
  0x28   :  { %v918_v61 = vpop.eup %917 }
  0x29   :  { %201 = vperm.xlu1 %860, %v890_v37   ;;  %v920_v62 = vpop.eup %919 }
  0x2a   :  { %196 = vperm.xlu0 %859, %v892_v39   ;;  %v922_v63 = vpop.eup %921  ;;  %v103_v39 = vld [vmem:[%s1378_s2 + $0x50] sm:$0xff] }
  0x2d   :  { %211 = vperm.xlu1 %860, %v894_v41  }
  0x2e   :  { %206 = vperm.xlu0 %859, %v896_v43  }
  0x31   :  { %221 = vperm.xlu1 %860, %v898_v45   ;;  %v106_v45 = vld [vmem:[%s1378_s2 + $0x68] sm:$0xff] }
  0x32   :  { %216 = vperm.xlu0 %859, %v900_v47  }
  0x35   :  { %231 = vperm.xlu1 %860, %v902_v49  }
  0x36   :  { %226 = vperm.xlu0 %859, %v904_v51  }
  0x39   :  { %241 = vperm.xlu1 %860, %v906_v53   ;;  %v107_v53 = vld [vmem:[%s1378_s2 + $0x70] sm:$0xff] }
  0x3a   :  { %236 = vperm.xlu0 %859, %v908_v55  }
  0x3d   :  { %251 = vperm.xlu1 %860, %v910_v56  }
  0x3e   :  { %246 = vperm.xlu0 %859, %v912_v58  }
  0x41   :  { %261 = vperm.xlu1 %860, %v914_v59   ;;  %v110_v59 = vld [vmem:[%s1378_s2 + $0x88] sm:$0xff] }
  0x42   :  { %256 = vperm.xlu0 %859, %v916_v60   ;;  %v109_v60 = vld [vmem:[%s1378_s2 + $0x80] sm:$0xff] }
  0x45   :  { %271 = vperm.xlu1 %860, %v918_v61  }
  0x46   :  { %266 = vperm.xlu0 %859, %v920_v62  }
  0x4a   :  { %276 = vperm.xlu0 %859, %v922_v63  }
  0x8c   :  { %v137_v2 = vpop.permute.xlu1 %136 }
  0x8d   :  { %v127_v3 = vpop.permute.xlu0 %126  ;;  %v281_v12 = vmul.f32 %v137_v2, %v95_v7  ;;  %v112_v2 = vld [vmem:[%s1378_s2 + $0x98] sm:$0xff] }
  0x8e   :  { %v279_v10 = vmul.f32 %v127_v3, %v93_v4  ;;  %v111_v3 = vld [vmem:[%s1378_s2 + $0x90] sm:$0xff] }
  0x90   :  { %v142_v6 = vpop.permute.xlu1 %141 }
  0x91   :  { %v132_v9 = vpop.permute.xlu0 %131  ;;  %v282_v13 = vmul.f32 %v142_v6, %v96_v8 }
  0x92   :  { %v280_v11 = vmul.f32 %v132_v9, %v94_v5  ;;  %v114_v9 = vld [vmem:[%s1378_s2 + $0xa8] sm:$0xff] }
  0x93   :  { %v775_v20 = vpack.c.bf16 %v282_v13, %v281_v12 }
  0x94   :  { %v152_v14 = vpop.permute.xlu1 %151  ;;  %v772_v15 = vpack.c.bf16 %v280_v11, %v279_v10  ;;  %v113_v10 = vld [vmem:[%s1378_s2 + $0xa0] sm:$0xff] }
  0x95   :  { %v147_v18 = vpop.permute.xlu0 %146  ;;  %v284_v21 = vmul.f32 %v152_v14, %v98_v16  ;;  %v116_v16 = vld [vmem:[%s1378_s2 + $0xb8] sm:$0xff] }
  0x96   :  { %773 = vmatpush1.bf16.msra.mxu0 %v772_v15  ;;  %840 = vmatpush1.bf16.msra.mxu1 %v772_v15  ;;  %v283_v22 = vmul.f32 %v147_v18, %v97_v17  ;;  %v115_v17 = vld [vmem:[%s1378_s2 + $0xb0] sm:$0xff] }
  0x97   :  { %774 = vmatprep.subr.bf16.mxu0 %v926_v19  ;;  %825 = vmatprep.subr.bf16.mxu1 %v926_v19 }
  0x98   :  { %v162_v23 = vpop.permute.xlu1 %161  ;;  %v778_v27 = vpack.c.bf16 %v284_v21, %v283_v22 }
  0x99   :  { %v157_v26 = vpop.permute.xlu0 %156  ;;  %v286_v28 = vmul.f32 %v162_v23, %v100_v24  ;;  %v118_v24 = vld [vmem:[%s1378_s2 + $0xc8] sm:$0xff] }
  0x9a   :  { %776 = vmatpush1.bf16.msra.mxu0 %v775_v20  ;;  %841 = vmatpush1.bf16.msra.mxu1 %v775_v20  ;;  %v285_v29 = vmul.f32 %v157_v26, %v99_v25  ;;  %v117_v25 = vld [vmem:[%s1378_s2 + $0xc0] sm:$0xff] }
  0x9b   :  { %777 = vmatprep.subr.bf16.mxu0 %v926_v19  ;;  %826 = vmatprep.subr.bf16.mxu1 %v926_v19 }
  0x9c   :  { %v172_v30 = vpop.permute.xlu1 %171  ;;  %v781_v34 = vpack.c.bf16 %v286_v28, %v285_v29 }
  0x9d   :  { %v167_v33 = vpop.permute.xlu0 %166  ;;  %v288_v35 = vmul.f32 %v172_v30, %v102_v31  ;;  %v120_v31 = vld [vmem:[%s1378_s2 + $0xd8] sm:$0xff] }
  0x9e   :  { %779 = vmatpush1.bf16.msra.mxu0 %v778_v27  ;;  %842 = vmatpush1.bf16.msra.mxu1 %v778_v27  ;;  %v287_v36 = vmul.f32 %v167_v33, %v101_v32  ;;  %v119_v32 = vld [vmem:[%s1378_s2 + $0xd0] sm:$0xff] }
  0x9f   :  { %780 = vmatprep.subr.bf16.mxu0 %v926_v19  ;;  %827 = vmatprep.subr.bf16.mxu1 %v926_v19 }
  0xa0   :  { %v182_v37 = vpop.permute.xlu1 %181  ;;  %v784_v41 = vpack.c.bf16 %v288_v35, %v287_v36 }
  0xa1   :  { %v177_v40 = vpop.permute.xlu0 %176  ;;  %v290_v42 = vmul.f32 %v182_v37, %v104_v38  ;;  %v122_v37 = vld [vmem:[%s1378_s2 + $0xe8] sm:$0xff] }
  0xa2   :  { %782 = vmatpush1.bf16.msra.mxu0 %v781_v34  ;;  %843 = vmatpush1.bf16.msra.mxu1 %v781_v34  ;;  %v289_v43 = vmul.f32 %v177_v40, %v103_v39  ;;  %v121_v39 = vld [vmem:[%s1378_s2 + $0xe0] sm:$0xff] }
  0xa3   :  { %783 = vmatprep.subr.bf16.mxu0 %v926_v19  ;;  %828 = vmatprep.subr.bf16.mxu1 %v926_v19 }
  0xa4   :  { %v192_v44 = vpop.permute.xlu1 %191  ;;  %v787_v48 = vpack.c.bf16 %v290_v42, %v289_v43 }
  0xa5   :  { %v187_v47 = vpop.permute.xlu0 %186  ;;  %v292_v49 = vmul.f32 %v192_v44, %v106_v45  ;;  %v123_v45 = vld [vmem:[%s1378_s2 + $0xf0] sm:$0x7] }
  0xa6   :  { %785 = vmatpush1.bf16.msra.mxu0 %v784_v41  ;;  %844 = vmatpush1.bf16.msra.mxu1 %v784_v41  ;;  %v291_v50 = vmul.f32 %v187_v47, %v105_v46  ;;  %v927_v47 = vmov 0.0  }
  0xa7   :  { %786 = vmatprep.subr.bf16.mxu0 %v926_v19  ;;  %829 = vmatprep.subr.bf16.mxu1 %v926_v19 }
  0xa8   :  { %v202_v51 = vpop.permute.xlu1 %201  ;;  %v790_v55 = vpack.c.bf16 %v292_v49, %v291_v50  ;;  %v310_v49 = vld [vmem:[%s1377_s0] sm:$0xff]  ;;  %v313_v50 = vld [vmem:[%s1377_s0 + $0x18] sm:$0xff] }
  0xa9   :  { %v197_v54 = vpop.permute.xlu0 %196  ;;  %v294_v56 = vmul.f32 %v202_v51, %v108_v52  ;;  %v325_v51 = vld [vmem:[%s1377_s0 + $0x78] sm:$0xff]  ;;  %v312_v52 = vld [vmem:[%s1377_s0 + $0x10] sm:$0xff] }
  0xaa   :  { %788 = vmatpush1.bf16.msra.mxu0 %v787_v48  ;;  %845 = vmatpush1.bf16.msra.mxu1 %v787_v48  ;;  %v293_v57 = vmul.f32 %v197_v54, %v107_v53  ;;  %v324_v53 = vld [vmem:[%s1377_s0 + $0x70] sm:$0xff]  ;;  %v315_v54 = vld [vmem:[%s1377_s0 + $0x28] sm:$0xff] }
  0xab   :  { %789 = vmatprep.subr.bf16.mxu0 %v926_v19  ;;  %830 = vmatprep.subr.bf16.mxu1 %v926_v19 }
  0xac   :  { %v212_v58 = vpop.permute.xlu1 %211  ;;  %v793_v62 = vpack.c.bf16 %v294_v56, %v293_v57  ;;  %v317_v56 = vld [vmem:[%s1377_s0 + $0x38] sm:$0xff]  ;;  %v316_v57 = vld [vmem:[%s1377_s0 + $0x30] sm:$0xff] }
  0xad   :  { %v207_v61 = vpop.permute.xlu0 %206  ;;  %v296_v63 = vmul.f32 %v212_v58, %v110_v59  ;;  %v319_v58 = vld [vmem:[%s1377_s0 + $0x48] sm:$0xff]  ;;  %v318_v59 = vld [vmem:[%s1377_s0 + $0x40] sm:$0xff] }
  0xae   :  { %791 = vmatpush1.bf16.msra.mxu0 %v790_v55  ;;  %846 = vmatpush1.bf16.msra.mxu1 %v790_v55  ;;  %v295_v0 = vmul.f32 %v207_v61, %v109_v60  ;;  %v314_v55 = vld [vmem:[%s1377_s0 + $0x20] sm:$0xff]  ;;  %v321_v60 = vld [vmem:[%s1377_s0 + $0x58] sm:$0xff]  ;;  %v320_v61 = vld [vmem:[%s1377_s0 + $0x50] sm:$0xff] }
  0xaf   :  { %792 = vmatprep.subr.bf16.mxu0 %v926_v19  ;;  %831 = vmatprep.subr.bf16.mxu1 %v926_v19 }
  0xb0   :  { %v222_v1 = vpop.permute.xlu1 %221  ;;  %v796_v5 = vpack.c.bf16 %v296_v63, %v295_v0  ;;  %v476_v63 = vld [vmem:[%s1379_s4 + $0x8] sm:$0xff] }
  0xb1   :  { %v217_v4 = vpop.permute.xlu0 %216  ;;  %v298_v6 = vmul.f32 %v222_v1, %v112_v2  ;;  %v477_v1 = vld [vmem:[%s1379_s4 + $0x10] sm:$0xff]  ;;  %v478_v2 = vld [vmem:[%s1379_s4 + $0x18] sm:$0xff] }
  0xb2   :  { %794 = vmatpush1.bf16.msra.mxu0 %v793_v62  ;;  %847 = vmatpush1.bf16.msra.mxu1 %v793_v62  ;;  %v297_v7 = vmul.f32 %v217_v4, %v111_v3  ;;  %v475_v62 = vld [vmem:[%s1379_s4] sm:$0xff]  ;;  %v820_v3 = vpack.c.bf16 %v478_v2, %v477_v1  ;;  %v624_v1 = vld [vmem:[%s1382_s7 + $0x28] sm:$0xff] }
  0xb3   :  { %795 = vmatprep.subr.bf16.mxu0 %v926_v19  ;;  %832 = vmatprep.subr.bf16.mxu1 %v926_v19  ;;  %v816_v0 = vpack.c.bf16 %v476_v63, %v475_v62  ;;  %v712_v4 = vld [vmem:[%s1380_s3] ss:$0 sm:$0xff] }
  0xb4   :  { %v232_v8 = vpop.permute.xlu1 %231  ;;  %v799_v12 = vpack.c.bf16 %v298_v6, %v297_v7 }
  0xb5   :  { %v227_v11 = vpop.permute.xlu0 %226  ;;  %v300_v13 = vmul.f32 %v232_v8, %v114_v9 }
  0xb6   :  { %797 = vmatpush1.bf16.msra.mxu0 %v796_v5  ;;  %848 = vmatpush1.bf16.msra.mxu1 %v796_v5  ;;  %v299_v14 = vmul.f32 %v227_v11, %v113_v10 }
  0xb7   :  { %798 = vmatprep.subr.bf16.mxu0 %v926_v19  ;;  %833 = vmatprep.subr.bf16.mxu1 %v926_v19 }
  0xb8   :  { %v242_v15 = vpop.permute.xlu1 %241  ;;  %v802_v20 = vpack.c.bf16 %v300_v13, %v299_v14 }
  0xb9   :  { %v237_v18 = vpop.permute.xlu0 %236  ;;  %v302_v21 = vmul.f32 %v242_v15, %v116_v16 }
  0xba   :  { %800 = vmatpush1.bf16.msra.mxu0 %v799_v12  ;;  %849 = vmatpush1.bf16.msra.mxu1 %v799_v12  ;;  %v301_v22 = vmul.f32 %v237_v18, %v115_v17 }
  0xbb   :  { %801 = vmatprep.subr.bf16.mxu0 %v926_v19  ;;  %834 = vmatprep.subr.bf16.mxu1 %v926_v19 }
  0xbc   :  { %v252_v23 = vpop.permute.xlu1 %251  ;;  %v805_v27 = vpack.c.bf16 %v302_v21, %v301_v22 }
  0xbd   :  { %v247_v26 = vpop.permute.xlu0 %246  ;;  %v304_v28 = vmul.f32 %v252_v23, %v118_v24 }
  0xbe   :  { %803 = vmatpush1.bf16.msra.mxu0 %v802_v20  ;;  %850 = vmatpush1.bf16.msra.mxu1 %v802_v20  ;;  %v303_v29 = vmul.f32 %v247_v26, %v117_v25 }
  0xbf   :  { %804 = vmatprep.subr.bf16.mxu0 %v926_v19  ;;  %835 = vmatprep.subr.bf16.mxu1 %v926_v19 }
  0xc0   :  { %v262_v30 = vpop.permute.xlu1 %261  ;;  %v808_v34 = vpack.c.bf16 %v304_v28, %v303_v29 }
  0xc1   :  { %v257_v33 = vpop.permute.xlu0 %256  ;;  %v306_v35 = vmul.f32 %v262_v30, %v120_v31 }
  0xc2   :  { %806 = vmatpush1.bf16.msra.mxu0 %v805_v27  ;;  %851 = vmatpush1.bf16.msra.mxu1 %v805_v27  ;;  %v305_v36 = vmul.f32 %v257_v33, %v119_v32 }
  0xc3   :  { %807 = vmatprep.subr.bf16.mxu0 %v926_v19  ;;  %836 = vmatprep.subr.bf16.mxu1 %v926_v19 }
  0xc4   :  { %v272_v38 = vpop.permute.xlu1 %271  ;;  %v811_v41 = vpack.c.bf16 %v306_v35, %v305_v36 }
  0xc5   :  { %v267_v40 = vpop.permute.xlu0 %266  ;;  %v308_v42 = vmul.f32 %v272_v38, %v122_v37  ;;  %v616_v38 = vld [vmem:[%s1381_s6] sm:$0x1] }
  0xc6   :  { %809 = vmatpush1.bf16.msra.mxu0 %v808_v34  ;;  %852 = vmatpush1.bf16.msra.mxu1 %v808_v34  ;;  %v307_v43 = vmul.f32 %v267_v40, %v121_v39  ;;  %v617_v39 = vmul.f32 1.442695, %v616_v38  ;;  %v628_v40 = vlaneseq }
  0xc7   :  { %810 = vmatprep.subr.bf16.mxu0 %v926_v19  ;;  %837 = vmatprep.subr.bf16.mxu1 %v926_v19 }
  0xc8   :  { %v814_v44 = vpack.c.bf16 %v308_v42, %v307_v43  ;;  %923 = vpow2.f32 %v617_v39 }
  0xc9   :  { %v277_v46 = vpop.permute.xlu0 %276 }
  0xca   :  { %812 = vmatpush1.bf16.msra.mxu0 %v811_v41  ;;  %853 = vmatpush1.bf16.msra.mxu1 %v811_v41  ;;  %v309_v48 = vmul.f32 %v277_v46, %v123_v45  ;;  %v629_v41 = vshrl.u32 %v628_v40, 7  ;;  %v620_v45 = vld [vmem:[%s1382_s7 + $0x8] sm:$0xff] }
  0xcb   :  { %813 = vmatprep.subr.bf16.mxu0 %v926_v19  ;;  %838 = vmatprep.subr.bf16.mxu1 %v926_v19  ;;  %v322_v19 = vld [vmem:[%s1377_s0 + $0x60] sm:$0xff] }
  0xcc   :  { %v630_v42 = vsub.s32 0, %v629_v41 }
  0xce   :  { %815 = vmatpush1.bf16.msra.mxu0 %v814_v44  ;;  %854 = vmatpush1.bf16.msra.mxu1 %v814_v44 }
  0xcf   :  { %422 = vmatprep.subr.mxu0 %v927_v47  ;;  %839 = vmatprep.subr.mxu1 %v927_v47  ;;  %v619_v47 = vld [vmem:[%s1382_s7] sm:$0xff] }
  0xd2   :  { %713 = vmatpush1.msk.msra.mxu0 %vm358_vm1, %v309_v48  ;;  %855 = vmatpush1.msk.msra.mxu1 %vm358_vm1, %v309_v48  ;;  %v924_v43 = vpop.eup %923 }
  0xd3   :  { %427 = vmatmul.mubr.f32.vlgmr.msra.gmra.mrb[0].mxu0 %v310_v49  ;;  %457 = vmatmul.mubr.f32.vlgmr.msra.gmra.mrb[0].mxu1 %v322_v19  ;;  %v631_v44 = vrot.slane %v924_v43, %v630_v42  ;;  %v659_v49 = vmul.f32 -0.5, %v620_v45  ;;  %v678_v19 = vrot.slane %v616_v38, %v630_v42 }
  0xd4   :  { %715 = vmatprep.mubr.msk.f32.mxu0 %vm333_vm0, %v313_v50  ;;  %721 = vmatprep.mubr.msk.f32.mxu1 %vm333_vm0, %v325_v51  ;;  %v658_v50 = vmul.f32 -0.5, %v619_v47 }
  0xd5   :  { %817 = vmatprep.subr.bf16.mxu1 %v816_v0  ;;  %v1279_v46 = vmul.f32 %v631_v44, %v620_v45  ;;  %v1284_v48 = vmul.f32 %v631_v44, %v619_v47  ;;  %v667_v51 = vmul.f32 %v659_v49, %v620_v45 }
  0xd6   :  { %819 = vmatpush3.bf16.msra.mxu1 %v816_v0 }
  0xd7   :  { %432 = vmatmul.mubr.f32.gmra.mrb[2].mxu0 %v312_v52  ;;  %462 = vmatmul.mubr.f32.gmra.mrb[2].mxu1 %v324_v53  ;;  %v666_v52 = vmul.f32 %v658_v50, %v619_v47  ;;  %v622_v53 = vld [vmem:[%s1382_s7 + $0x18] sm:$0xff] }
  0xd8   :  { %716 = vmatprep.mubr.msk.f32.mxu0 %vm333_vm0, %v315_v54  ;;  %821 = vmatprep.subr.bf16.mxu1 %v820_v3  ;;  %v681_v54 = vsub.f32 %v667_v51, %v678_v19 }
  0xda   :  { %823 = vmatpush3.bf16.msra.mxu1 %v820_v3  ;;  %v638_v3 = vmul.f32 %v631_v44, %v624_v1 }
  0xdb   :  { %437 = vmatmul.mubr.f32.gmra.mrb[4].mxu0 %v314_v55  ;;  %v1289_v55 = vmul.f32 %v631_v44, %v622_v53 }
  0xdc   :  { %717 = vmatprep.mubr.msk.f32.mxu0 %vm333_vm0, %v317_v56  ;;  %v621_v56 = vld [vmem:[%s1382_s7 + $0x10] sm:$0xff] }
  0xdd   :  { %v660_v62 = vmul.f32 -0.5, %v621_v56 }
  0xdf   :  { %442 = vmatmul.mubr.f32.gmra.mrb[6].mxu0 %v316_v57  ;;  %v680_v57 = vsub.f32 %v666_v52, %v678_v19  ;;  %v668_v0 = vmul.f32 %v660_v62, %v621_v56 }
  0xe0   :  { %718 = vmatprep.mubr.msk.f32.mxu0 %vm333_vm0, %v319_v58  ;;  %v635_v58 = vmul.f32 %v631_v44, %v621_v56 }
  0xe3   :  { %447 = vmatmul.mubr.f32.gmra.mrb[8].mxu0 %v318_v59  ;;  %v732_v59 = vadd.f32 -0.9189385, %v681_v54 }
  0xe4   :  { %719 = vmatprep.mubr.msk.f32.mxu0 %vm333_vm0, %v321_v60  ;;  %v731_v60 = vadd.f32 -0.9189385, %v680_v57 }
  0xe5   :  { %697 = vst.msk [vmem:[%s1383_s9 + $0x8] sm:$0xff] %vm649_vm3, %v732_v59 }
  0xe6   :  { %696 = vst.msk [vmem:[%s1383_s9] sm:$0xff] %vm649_vm3, %v731_v60 }
  0xe7   :  { %452 = vmatmul.mubr.f32.gmra.mrb[10].mxu0 %v320_v61  ;;  %v661_v61 = vmul.f32 -0.5, %v622_v53 }
  0xe9   :  { %v669_v63 = vmul.f32 %v661_v61, %v622_v53 }
  0xeb   :  { %v683_v2 = vsub.f32 %v669_v63, %v678_v19 }
 0x1a6   :  { %v428_v5 = vpop.f32.mrb[0].mxu0  ;;  %v458_v6 = vpop.f32.mrb[0].mxu1 }
 0x1a7   :  { %v429_v7 = vadd.f32 %v712_v4, %v428_v5  ;;  %v430_v8 = vpop.f32.mrb[1].mxu0  ;;  %v460_v9 = vpop.f32.mrb[1].mxu1  ;;  %v459_v29 = vadd.f32 %v712_v4, %v458_v6  ;;  %v626_v5 = vld [vmem:[%s1382_s7 + $0x38] sm:$0xff]  ;;  %v625_v6 = vld [vmem:[%s1382_s7 + $0x30] sm:$0xff] }
 0x1a8   :  { %v663_v8 = vmul.f32 -0.5, %v624_v1 }
 0x1a9   :  { %v467_v10 = vmax.f32 %v429_v7, 0.0  ;;  %v473_v35 = vmax.f32 %v459_v29, 0.0  ;;  %v682_v7 = vsub.f32 %v668_v0, %v678_v19 }
 0x1aa   :  { %v433_v11 = vpop.f32.mrb[2].mxu0  ;;  %v463_v12 = vpop.f32.mrb[2].mxu1 }
 0x1ab   :  { %v434_v13 = vadd.f32 %v712_v4, %v433_v11  ;;  %v435_v14 = vpop.f32.mrb[3].mxu0  ;;  %759 = vmatprep.mubr.msk.f32.mxu1 %vm486_vm2, %v467_v10  ;;  %v465_v15 = vpop.f32.mrb[3].mxu1  ;;  %v464_v34 = vadd.f32 %v712_v4, %v463_v12  ;;  %v734_v11 = vadd.f32 -0.9189385, %v683_v2  ;;  %v665_v12 = vmul.f32 -0.5, %v626_v5 }
 0x1ac   :  { %v733_v14 = vadd.f32 -0.9189385, %v682_v7  ;;  %v671_v15 = vmul.f32 %v663_v8, %v624_v1 }
 0x1ad   :  { %v468_v16 = vmax.f32 %v434_v13, 0.0  ;;  %v474_v37 = vmax.f32 %v464_v34, 0.0  ;;  %v664_v13 = vmul.f32 -0.5, %v625_v6  ;;  %699 = vst.msk [vmem:[%s1383_s9 + $0x18] sm:$0xff] %vm649_vm3, %v734_v11 }
 0x1ae   :  { %v438_v17 = vpop.f32.mrb[4].mxu0  ;;  %698 = vst.msk [vmem:[%s1383_s9 + $0x10] sm:$0xff] %vm649_vm3, %v733_v14 }
 0x1af   :  { %v439_v18 = vadd.f32 %v712_v4, %v438_v17  ;;  %v440_v20 = vpop.f32.mrb[5].mxu0  ;;  %760 = vmatmul.mubr.msk.f32.vlgmr.msra.gmra.mrb[4].mxu1 %vm486_vm2, %v468_v16  ;;  %v640_v17 = vmul.f32 %v631_v44, %v626_v5 }
 0x1b0   :  { %v672_v20 = vmul.f32 %v664_v13, %v625_v6 }
 0x1b1   :  { %v469_v21 = vmax.f32 %v439_v18, 0.0  ;;  %v673_v18 = vmul.f32 %v665_v12, %v626_v5 }
 0x1b2   :  { %v443_v22 = vpop.f32.mrb[6].mxu0 }
 0x1b3   :  { %v444_v23 = vadd.f32 %v712_v4, %v443_v22  ;;  %v445_v24 = vpop.f32.mrb[7].mxu0  ;;  %762 = vmatprep.mubr.msk.f32.mxu1 %vm486_vm2, %v469_v21  ;;  %v685_v21 = vsub.f32 %v671_v15, %v678_v19 }
 0x1b4   :  { %v687_v24 = vsub.f32 %v673_v18, %v678_v19 }
 0x1b5   :  { %v470_v25 = vmax.f32 %v444_v23, 0.0  ;;  %v639_v23 = vmul.f32 %v631_v44, %v625_v6 }
 0x1b6   :  { %v448_v26 = vpop.f32.mrb[8].mxu0 }
 0x1b7   :  { %v449_v27 = vadd.f32 %v712_v4, %v448_v26  ;;  %v450_v28 = vpop.f32.mrb[9].mxu0  ;;  %763 = vmatmul.mubr.msk.f32.gmra.mrb[6].mxu1 %vm486_vm2, %v470_v25  ;;  %v686_v25 = vsub.f32 %v672_v20, %v678_v19  ;;  %v736_v26 = vadd.f32 -0.9189385, %v685_v21 }
 0x1b8   :  { %v738_v28 = vadd.f32 -0.9189385, %v687_v24 }
 0x1b9   :  { %v471_v30 = vmax.f32 %v449_v27, 0.0  ;;  %v737_v29 = vadd.f32 -0.9189385, %v686_v25  ;;  %701 = vst.msk [vmem:[%s1383_s9 + $0x28] sm:$0xff] %vm649_vm3, %v736_v26 }
 0x1ba   :  { %v453_v31 = vpop.f32.mrb[10].mxu0  ;;  %703 = vst.msk [vmem:[%s1383_s9 + $0x38] sm:$0xff] %vm649_vm3, %v738_v28 }
 0x1bb   :  { %v454_v32 = vadd.f32 %v712_v4, %v453_v31  ;;  %v455_v33 = vpop.f32.mrb[11].mxu0  ;;  %765 = vmatprep.mubr.msk.f32.mxu1 %vm486_vm2, %v471_v30  ;;  %v623_v4 = vld [vmem:[%s1382_s7 + $0x20] sm:$0xff]  ;;  %702 = vst.msk [vmem:[%s1383_s9 + $0x30] sm:$0xff] %vm649_vm3, %v737_v29 }
 0x1bc   :  { %v637_v9 = vmul.f32 %v631_v44, %v623_v4  ;;  %v662_v10 = vmul.f32 -0.5, %v623_v4  ;;  %v722_v30 = vld [vmem:[%s1384_s5] ss:$0 sm:$0xff] }
 0x1bd   :  { %v472_v36 = vmax.f32 %v454_v32, 0.0 }
 0x1be   :  { %v670_v16 = vmul.f32 %v662_v10, %v623_v4 }
 0x1bf   :  { %766 = vmatmul.mubr.msk.f32.gmra.mrb[8].mxu1 %vm486_vm2, %v472_v36 }
 0x1c0   :  { %768 = vmatprep.mubr.msk.f32.mxu1 %vm486_vm2, %v473_v35  ;;  %v684_v22 = vsub.f32 %v670_v16, %v678_v19 }
 0x1c2   :  { %v735_v27 = vadd.f32 -0.9189385, %v684_v22 }
 0x1c3   :  { %769 = vmatmul.mubr.msk.f32.gmra.mrb[10].mxu1 %vm486_vm2, %v474_v37 }
 0x1c4   :  { %700 = vst.msk [vmem:[%s1383_s9 + $0x20] sm:$0xff] %vm649_vm3, %v735_v27 }
 0x282   :  { %v761_v31 = vpop.f32.mrb[4].mxu1 }
 0x283   :  { %v583_v32 = vadd.f32 %v761_v31, %v722_v30  ;;  %v577_v33 = vpop.f32.mrb[5].mxu1 }
 0x284   :  { %v578_v34 = vadd.f32 %v722_v30, %v577_v33 }
 0x285   :  { %v642_v35 = vadd.f32 %v1279_v46, %v583_v32 }
 0x286   :  { %v641_v36 = vadd.f32 %v1284_v48, %v578_v34 }
 0x287   :  { %651 = vst.msk [vmem:[%s1385_s8 + $0x8] sm:$0xff] %vm649_vm3, %v642_v35 }
 0x288   :  { %650 = vst.msk [vmem:[%s1385_s8] sm:$0xff] %vm649_vm3, %v641_v36 }
 0x28a   :  { %v764_v37 = vpop.f32.mrb[6].mxu1 }
 0x28b   :  { %v593_v38 = vadd.f32 %v764_v37, %v722_v30  ;;  %v587_v39 = vpop.f32.mrb[7].mxu1 }
 0x28c   :  { %v588_v40 = vadd.f32 %v722_v30, %v587_v39 }
 0x28d   :  { %v644_v41 = vadd.f32 %v1289_v55, %v593_v38 }
 0x28e   :  { %v643_v42 = vadd.f32 %v635_v58, %v588_v40 }
 0x28f   :  { %653 = vst.msk [vmem:[%s1385_s8 + $0x18] sm:$0xff] %vm649_vm3, %v644_v41 }
 0x290   :  { %652 = vst.msk [vmem:[%s1385_s8 + $0x10] sm:$0xff] %vm649_vm3, %v643_v42 }
 0x292   :  { %v767_v43 = vpop.f32.mrb[8].mxu1 }
 0x293   :  { %v603_v44 = vadd.f32 %v767_v43, %v722_v30  ;;  %v597_v45 = vpop.f32.mrb[9].mxu1 }
 0x294   :  { %v598_v46 = vadd.f32 %v722_v30, %v597_v45 }
 0x295   :  { %v646_v47 = vadd.f32 %v638_v3, %v603_v44 }
 0x296   :  { %v645_v48 = vadd.f32 %v637_v9, %v598_v46  ;;  %v770_v49 = vpop.f32.mrb[10].mxu1 }
 0x297   :  { %655 = vst.msk [vmem:[%s1385_s8 + $0x28] sm:$0xff] %vm649_vm3, %v646_v47  ;;  %v613_v19 = vadd.f32 %v770_v49, %v722_v30  ;;  %v607_v50 = vpop.f32.mrb[11].mxu1 }
 0x298   :  { %654 = vst.msk [vmem:[%s1385_s8 + $0x20] sm:$0xff] %vm649_vm3, %v645_v48  ;;  %v608_v51 = vadd.f32 %v722_v30, %v607_v50 }
 0x299   :  { %v648_v52 = vadd.f32 %v640_v17, %v613_v19 }
 0x29a   :  { %v647_v53 = vadd.f32 %v639_v23, %v608_v51 }
 0x29b   :  { %657 = vst.msk [vmem:[%s1385_s8 + $0x38] sm:$0xff] %vm649_vm3, %v648_v52 }
 0x29c   :  { %656 = vst.msk [vmem:[%s1385_s8 + $0x30] sm:$0xff] %vm649_vm3, %v647_v53 }

</bundles_post_ra>
